<compile_context>
chip_gen: v7x
topology: tpu7x:2x2x1
jax: 0.10.0
libtpu: 0.0.40
codegen_flags: <defaults>
</compile_context>

<pallas_src>
import math
import functools

import jax
import jax.numpy as jnp
from jax.experimental import pallas as pl
from jax.experimental.pallas import tpu as pltpu


def mha_kernel(q_ref, k_ref, v_ref, wq_ref, wk_ref, wv_ref, wo_ref, o_ref,
               *, num_heads, batch):
    """Whole MHA forward in one invocation (everything resident in VMEM).

    q_ref/k_ref/v_ref : (B*L, Din)   bf16 activations (batch folded into rows)
    wq/wk/wv_ref      : (nh, Din, dh) bf16, per-head slabs; W_q pre-scaled by 1/sqrt(dh)
    wo_ref            : (nh, dh, H)   bf16, per-head slabs of W_o^T
    o_ref             : (B*Lq, H)     f32 output
    """
    nh = num_heads
    B = batch
    n_q, d_q = q_ref.shape
    n_k, d_k = k_ref.shape
    d_v = v_ref.shape[1]
    dh = wq_ref.shape[-1]
    Lq = n_q // B
    Lk = n_k // B

    # --- Q/K/V projections: one head-batched einsum per stage
    #     (bf16 MXU operands, f32 accumulation; no lane slicing, no .T).
    qb = jnp.broadcast_to(q_ref[...][None], (nh, n_q, d_q))
    kb = jnp.broadcast_to(k_ref[...][None], (nh, n_k, d_k))
    vb = jnp.broadcast_to(v_ref[...][None], (nh, n_k, d_v))
    qp = jnp.einsum("hnd,hde->hne", qb, wq_ref[...],
                    preferred_element_type=jnp.float32)      # (nh, B*Lq, dh)
    kp = jnp.einsum("hnd,hde->hne", kb, wk_ref[...],
                    preferred_element_type=jnp.float32)      # (nh, B*Lk, dh)
    vp = jnp.einsum("hnd,hde->hne", vb, wv_ref[...],
                    preferred_element_type=jnp.float32)      # (nh, B*Lk, dh)

    # --- Fold (head, batch) into a single leading batch axis so every
    #     attention stage is one batched einsum (leading-dim reshapes only;
    #     the minor dim never changes).
    qs = qp.reshape(nh * B, Lq, dh).astype(jnp.bfloat16)
    ks = kp.reshape(nh * B, Lk, dh).astype(jnp.bfloat16)
    vs = vp.reshape(nh * B, Lk, dh).astype(jnp.bfloat16)

    # --- Scaled dot-product attention. 1/sqrt(dh) is already folded into W_q;
    #     softmax kept in f32; the divide goes to the EUP via approx reciprocal.
    s = jnp.einsum("bqd,bkd->bqk", qs, ks,
                   preferred_element_type=jnp.float32)       # (nh*B, Lq, Lk)
    m = jnp.max(s, axis=-1, keepdims=True)
    e = jnp.exp(s - m)
    p = e * pl.reciprocal(jnp.sum(e, axis=-1, keepdims=True), approx=True)
    # TODO(synk): nn.Dropout on the attention weights is identity at inference.
    ctx = jnp.einsum("bqk,bkd->bqd", p.astype(jnp.bfloat16), vs,
                     preferred_element_type=jnp.float32)     # (nh*B, Lq, dh)

    # --- Output projection without a lane-dim concat:
    #     concat_h(ctx_h) @ W_o^T == sum_h ctx_h @ W_o^T[h*dh:(h+1)*dh, :]
    ctx_h = ctx.reshape(nh, n_q, dh).astype(jnp.bfloat16)    # (nh, B*Lq, dh)
    per_head = jnp.einsum("hnd,hdf->hnf", ctx_h, wo_ref[...],
                          preferred_element_type=jnp.float32)  # (nh, B*Lq, H)
    o_ref[...] = jnp.sum(per_head, axis=0)                   # (B*Lq, H)


def multi_head_attention(queries, keys, values, wq, wk, wv, wo, num_heads):
    B, Lq, Dq = queries.shape
    _, Lk, Dk = keys.shape
    _, _, Dv = values.shape
    H = wq.shape[0]
    dh = H // num_heads
    scale = 1.0 / math.sqrt(dh)

    # Host-side (one-time) weight packing:
    #  * (out, in) -> per-head (nh, Din, dh) so the kernel never transposes
    #    or lane-slices,
    #  * fold 1/sqrt(dh) into W_q,
    #  * cast to bf16 for full-rate MXU (f32 accumulation inside the kernel).
    def split_heads(w):                       # (H, Din) -> (nh, Din, dh)
        return jnp.swapaxes(w.reshape(num_heads, dh, w.shape[1]), 1, 2)

    wq_h = (split_heads(wq) * scale).astype(jnp.bfloat16)
    wk_h = split_heads(wk).astype(jnp.bfloat16)
    wv_h = split_heads(wv).astype(jnp.bfloat16)
    wo_h = wo.T.reshape(num_heads, dh, H).astype(jnp.bfloat16)

    # Fold batch into rows; cast activations to bf16 (halves kernel DMA).
    q2 = queries.reshape(B * Lq, Dq).astype(jnp.bfloat16)
    k2 = keys.reshape(B * Lk, Dk).astype(jnp.bfloat16)
    v2 = values.reshape(B * Lk, Dv).astype(jnp.bfloat16)

    kernel = functools.partial(mha_kernel, num_heads=num_heads, batch=B)
    vmem = pl.BlockSpec(memory_space=pltpu.MemorySpace.VMEM)
    out2 = pl.pallas_call(
        kernel,
        out_shape=jax.ShapeDtypeStruct((B * Lq, H), jnp.float32),
        in_specs=[vmem] * 7,
        out_specs=vmem,
    )(q2, k2, v2, wq_h, wk_h, wv_h, wo_h)
    return out2.reshape(B, Lq, H)


def _reference(queries, keys, values, wq, wk, wv, wo, num_heads):
    """Pure-JAX f32 reference mirroring the PyTorch module exactly."""
    def transpose_qkv(x):
        x = x.reshape(x.shape[0], x.shape[1], num_heads, -1)
        x = jnp.transpose(x, (0, 2, 1, 3))
        return x.reshape(-1, x.shape[2], x.shape[3])

    def transpose_output(x):
        x = x.reshape(-1, num_heads, x.shape[1], x.shape[2])
        x = jnp.transpose(x, (0, 2, 1, 3))
        return x.reshape(x.shape[0], x.shape[1], -1)

    q = transpose_qkv(queries @ wq.T)
    k = transpose_qkv(keys @ wk.T)
    v = transpose_qkv(values @ wv.T)
    d = q.shape[-1]
    scores = jnp.einsum("bqd,bkd->bqk", q, k) / math.sqrt(d)
    attn = jax.nn.softmax(scores, axis=-1)
    out = jnp.einsum("bqk,bkd->bqd", attn, v)
    return transpose_output(out) @ wo.T


if __name__ == "__main__":
    # Small shapes implied by the module: batch=2, seq=8,
    # key/query/value_size=32, num_hiddens=32, num_heads=4 (head_dim=8).
    B, Lq, Lk = 2, 8, 8
    key_size = query_size = value_size = 32
    num_hiddens, num_heads = 32, 4

    root = jax.random.PRNGKey(0)
    kq, kk, kv, kwq, kwk, kwv, kwo = jax.random.split(root, 7)

    queries = jax.random.normal(kq, (B, Lq, query_size), dtype=jnp.float32)
    keys = jax.random.normal(kk, (B, Lk, key_size), dtype=jnp.float32)
    values = jax.random.normal(kv, (B, Lk, value_size), dtype=jnp.float32)

    # Deterministic Linear weights (out_features, in_features), bias=False.
    def init_w(k, out_f, in_f):
        bound = 1.0 / math.sqrt(in_f)
        return jax.random.uniform(k, (out_f, in_f), jnp.float32, -bound, bound)

    wq = init_w(kwq, num_hiddens, query_size)
    wk = init_w(kwk, num_hiddens, key_size)
    wv = init_w(kwv, num_hiddens, value_size)
    wo = init_w(kwo, num_hiddens, num_hiddens)

    out = multi_head_attention(queries, keys, values, wq, wk, wv, wo, num_heads)
    out = jax.block_until_ready(out)

    ref = _reference(queries, keys, values, wq, wk, wv, wo, num_heads)
    assert out.shape == (B, Lq, num_hiddens)
    # bf16 MXU operands + approx reciprocal vs. the f32 reference -> looser tol.
    assert jnp.allclose(out, ref, atol=5e-2, rtol=5e-2), "mismatch vs reference"

    print("KERNEL_OK")
</pallas_src>

<mosaic_0001>
module attributes {stable_mosaic.version = 11 : i64} {
  func.func @mha_kernel(%arg0: memref<16x32xbf16, #tpu.memory_space<vmem>>, %arg1: memref<16x32xbf16, #tpu.memory_space<vmem>>, %arg2: memref<16x32xbf16, #tpu.memory_space<vmem>>, %arg3: memref<4x32x8xbf16, #tpu.memory_space<vmem>>, %arg4: memref<4x32x8xbf16, #tpu.memory_space<vmem>>, %arg5: memref<4x32x8xbf16, #tpu.memory_space<vmem>>, %arg6: memref<4x8x32xbf16, #tpu.memory_space<vmem>>, %arg7: memref<16x32xf32, #tpu.memory_space<vmem>>) attributes {dimension_semantics = [], scalar_prefetch = 0 : i64, scratch_operands = 0 : i64, tpu.core_type = #tpu.core_type<tc>} {
    %c0 = arith.constant 0 : index
    %c0_0 = arith.constant 0 : index
    %0 = vector.load %arg0[%c0, %c0_0] : memref<16x32xbf16, #tpu.memory_space<vmem>>, vector<16x32xbf16>
    %1 = vector.shape_cast %0 : vector<16x32xbf16> to vector<1x16x32xbf16>
    %2 = vector.shape_cast %1 : vector<1x16x32xbf16> to vector<1x16x32xbf16>
    %3 = vector.broadcast %2 : vector<1x16x32xbf16> to vector<4x16x32xbf16>
    %c0_1 = arith.constant 0 : index
    %c0_2 = arith.constant 0 : index
    %4 = vector.load %arg1[%c0_1, %c0_2] : memref<16x32xbf16, #tpu.memory_space<vmem>>, vector<16x32xbf16>
    %5 = vector.shape_cast %4 : vector<16x32xbf16> to vector<1x16x32xbf16>
    %6 = vector.shape_cast %5 : vector<1x16x32xbf16> to vector<1x16x32xbf16>
    %7 = vector.broadcast %6 : vector<1x16x32xbf16> to vector<4x16x32xbf16>
    %c0_3 = arith.constant 0 : index
    %c0_4 = arith.constant 0 : index
    %8 = vector.load %arg2[%c0_3, %c0_4] : memref<16x32xbf16, #tpu.memory_space<vmem>>, vector<16x32xbf16>
    %9 = vector.shape_cast %8 : vector<16x32xbf16> to vector<1x16x32xbf16>
    %10 = vector.shape_cast %9 : vector<1x16x32xbf16> to vector<1x16x32xbf16>
    %11 = vector.broadcast %10 : vector<1x16x32xbf16> to vector<4x16x32xbf16>
    %c0_5 = arith.constant 0 : index
    %c0_6 = arith.constant 0 : index
    %c0_7 = arith.constant 0 : index
    %12 = vector.load %arg3[%c0_5, %c0_6, %c0_7] : memref<4x32x8xbf16, #tpu.memory_space<vmem>>, vector<4x32x8xbf16>
    "tpu.trace_start"() <{level = 10 : i32, message = "hnd,hde->hne"}> : () -> ()
    %cst = arith.constant dense<0.000000e+00> : vector<4x16x8xf32>
    %13 = tpu.matmul %3, %12, %cst {dimension_numbers = #tpu.dot_dimension_numbers<[2], [1], [1], [2], [0, 0, 0, 1, 1, 2], [0], [0]>} : vector<4x16x32xbf16>, vector<4x32x8xbf16>, vector<4x16x8xf32> -> vector<4x16x8xf32>
    "tpu.trace_stop"() : () -> ()
    %c0_8 = arith.constant 0 : index
    %c0_9 = arith.constant 0 : index
    %c0_10 = arith.constant 0 : index
    %14 = vector.load %arg4[%c0_8, %c0_9, %c0_10] : memref<4x32x8xbf16, #tpu.memory_space<vmem>>, vector<4x32x8xbf16>
    "tpu.trace_start"() <{level = 10 : i32, message = "hnd,hde->hne"}> : () -> ()
    %cst_11 = arith.constant dense<0.000000e+00> : vector<4x16x8xf32>
    %15 = tpu.matmul %7, %14, %cst_11 {dimension_numbers = #tpu.dot_dimension_numbers<[2], [1], [1], [2], [0, 0, 0, 1, 1, 2], [0], [0]>} : vector<4x16x32xbf16>, vector<4x32x8xbf16>, vector<4x16x8xf32> -> vector<4x16x8xf32>
    "tpu.trace_stop"() : () -> ()
    %c0_12 = arith.constant 0 : index
    %c0_13 = arith.constant 0 : index
    %c0_14 = arith.constant 0 : index
    %16 = vector.load %arg5[%c0_12, %c0_13, %c0_14] : memref<4x32x8xbf16, #tpu.memory_space<vmem>>, vector<4x32x8xbf16>
    "tpu.trace_start"() <{level = 10 : i32, message = "hnd,hde->hne"}> : () -> ()
    %cst_15 = arith.constant dense<0.000000e+00> : vector<4x16x8xf32>
    %17 = tpu.matmul %11, %16, %cst_15 {dimension_numbers = #tpu.dot_dimension_numbers<[2], [1], [1], [2], [0, 0, 0, 1, 1, 2], [0], [0]>} : vector<4x16x32xbf16>, vector<4x32x8xbf16>, vector<4x16x8xf32> -> vector<4x16x8xf32>
    "tpu.trace_stop"() : () -> ()
    %18 = vector.shape_cast %13 : vector<4x16x8xf32> to vector<8x8x8xf32>
    %19 = arith.truncf %18 : vector<8x8x8xf32> to vector<8x8x8xbf16>
    %20 = vector.shape_cast %15 : vector<4x16x8xf32> to vector<8x8x8xf32>
    %21 = arith.truncf %20 : vector<8x8x8xf32> to vector<8x8x8xbf16>
    %22 = vector.shape_cast %17 : vector<4x16x8xf32> to vector<8x8x8xf32>
    %23 = arith.truncf %22 : vector<8x8x8xf32> to vector<8x8x8xbf16>
    "tpu.trace_start"() <{level = 10 : i32, message = "bqd,bkd->bqk"}> : () -> ()
    %cst_16 = arith.constant dense<0.000000e+00> : vector<8x8x8xf32>
    %24 = tpu.matmul %19, %21, %cst_16 {dimension_numbers = #tpu.dot_dimension_numbers<[2], [2], [1], [1], [0, 0, 0, 1, 1, 1], [0], [0]>} : vector<8x8x8xbf16>, vector<8x8x8xbf16>, vector<8x8x8xf32> -> vector<8x8x8xf32>
    "tpu.trace_stop"() : () -> ()
    %cst_17 = arith.constant dense<0xFF800000> : vector<8x8xf32>
    %25 = vector.multi_reduction <maximumf>, %24, %cst_17 [2] : vector<8x8x8xf32> to vector<8x8xf32>
    %26 = vector.shape_cast %25 : vector<8x8xf32> to vector<8x8x1xf32>
    %27 = vector.broadcast %26 : vector<8x8x1xf32> to vector<8x8x8xf32>
    %28 = arith.subf %24, %27 : vector<8x8x8xf32>
    %29 = math.exp %28 : vector<8x8x8xf32>
    %cst_18 = arith.constant dense<0.000000e+00> : vector<8x8xf32>
    %30 = vector.multi_reduction <add>, %29, %cst_18 [2] : vector<8x8x8xf32> to vector<8x8xf32>
    %31 = vector.shape_cast %30 : vector<8x8xf32> to vector<8x8x1xf32>
    %32 = tpu.reciprocal %31 {approx = true} : vector<8x8x1xf32> -> vector<8x8x1xf32>
    %33 = vector.broadcast %32 : vector<8x8x1xf32> to vector<8x8x8xf32>
    %34 = arith.mulf %29, %33 : vector<8x8x8xf32>
    %35 = arith.truncf %34 : vector<8x8x8xf32> to vector<8x8x8xbf16>
    "tpu.trace_start"() <{level = 10 : i32, message = "bqk,bkd->bqd"}> : () -> ()
    %cst_19 = arith.constant dense<0.000000e+00> : vector<8x8x8xf32>
    %36 = tpu.matmul %35, %23, %cst_19 {dimension_numbers = #tpu.dot_dimension_numbers<[2], [1], [1], [2], [0, 0, 0, 1, 1, 2], [0], [0]>} : vector<8x8x8xbf16>, vector<8x8x8xbf16>, vector<8x8x8xf32> -> vector<8x8x8xf32>
    "tpu.trace_stop"() : () -> ()
    %37 = vector.shape_cast %36 : vector<8x8x8xf32> to vector<4x16x8xf32>
    %38 = arith.truncf %37 : vector<4x16x8xf32> to vector<4x16x8xbf16>
    %c0_20 = arith.constant 0 : index
    %c0_21 = arith.constant 0 : index
    %c0_22 = arith.constant 0 : index
    %39 = vector.load %arg6[%c0_20, %c0_21, %c0_22] : memref<4x8x32xbf16, #tpu.memory_space<vmem>>, vector<4x8x32xbf16>
    "tpu.trace_start"() <{level = 10 : i32, message = "hnd,hdf->hnf"}> : () -> ()
    %cst_23 = arith.constant dense<0.000000e+00> : vector<4x16x32xf32>
    %40 = tpu.matmul %38, %39, %cst_23 {dimension_numbers = #tpu.dot_dimension_numbers<[2], [1], [1], [2], [0, 0, 0, 1, 1, 2], [0], [0]>} : vector<4x16x8xbf16>, vector<4x8x32xbf16>, vector<4x16x32xf32> -> vector<4x16x32xf32>
    "tpu.trace_stop"() : () -> ()
    %cst_24 = arith.constant dense<0.000000e+00> : vector<16x32xf32>
    %41 = vector.multi_reduction <add>, %40, %cst_24 [0] : vector<4x16x32xf32> to vector<16x32xf32>
    %c0_25 = arith.constant 0 : index
    %c0_26 = arith.constant 0 : index
    %42 = vector.load %arg7[%c0_25, %c0_26] : memref<16x32xf32, #tpu.memory_space<vmem>>, vector<16x32xf32>
    tpu.vector_store %arg7[%c0_25, %c0_26], %41 {strides = array<i32>} : memref<16x32xf32, #tpu.memory_space<vmem>>, vector<16x32xf32>,
    return
  }
}

</mosaic_0001>

<bundles_post_ra>
// kernel: tpu_custom_call.1
= control target key start
LH: loop header
LB: loop body
LE: loop exit
PB: predicated region body
PF: predicated region fallthrough
CT: control target
= control target key end

     0   :  { %v2268_v1 = vmov 0.0   ;;  %vm2269_vm0 = vmmov 0   ;;  %vm67_vm1 = vcmask 261120   ;;  %s2660_s0 = inlined_call_operand.vmem [shape: bf16[16,32], index: 0, kind: input, shape index: {}]   ;;  %s2661_s1 = inlined_call_operand.vmem [shape: bf16[16,32], index: 1, kind: input, shape index: {}]   ;;  %s2662_s2 = inlined_call_operand.vmem [shape: bf16[16,32], index: 2, kind: input, shape index: {}]   ;;  %s2663_s3 = inlined_call_operand.vmem [shape: bf16[4,32,8], index: 3, kind: input, shape index: {}]   ;;  %s2664_s4 = inlined_call_operand.vmem [shape: bf16[4,32,8], index: 4, kind: input, shape index: {}]   ;;  %s2665_s5 = inlined_call_operand.vmem [shape: bf16[4,32,8], index: 5, kind: input, shape index: {}]   ;;  %s2666_s6 = inlined_call_operand.vmem [shape: bf16[4,8,32], index: 6, kind: input, shape index: {}]   ;;  %s2667_s7 = inlined_call_operand.hbm [shape: f32[16,32], index: 7, kind: output, shape index: {}]  }
   0x1   :  { %v2185_v0 = vld [vmem:[%s2663_s3] sm:$0xff]   ;;  %1964 = vmatprep.subr.bf16.mxu0 %v2268_v1  ;;  %v2186_v2 = vld [vmem:[%s2663_s3 + $0x8] sm:$0xff]   ;;  %1972 = vmatprep.subr.bf16.mxu1 %v2268_v1  ;;  %v2187_v3 = vld [vmem:[%s2663_s3 + $0x10] sm:$0xff]  }
   0x2   :  { %1965 = vmatpush3.bf16.msra.mxu0 %v2185_v0  ;;  %1968 = vmatprep.mubr.msk.bf16.mxu0 %vm2269_vm0, %v2268_v1  ;;  %v2188_v4 = vld [vmem:[%s2660_s0] sm:$0xff]   ;;  %v2190_v5 = vld [vmem:[%s2663_s3 + $0x18] sm:$0xff]   ;;  %v2192_v7 = vld [vmem:[%s2663_s3 + $0x30] sm:$0xff]  }
   0x3   :  { %1966 = vmatprep.subr.bf16.mxu0 %v2268_v1  ;;  %1976 = vmatprep.mubr.msk.bf16.mxu1 %vm2269_vm0, %v2268_v1  ;;  %v2189_v6 = vld [vmem:[%s2663_s3 + $0x20] sm:$0xff]   ;;  %v2191_v8 = vld [vmem:[%s2663_s3 + $0x28] sm:$0xff]   ;;  %v2194_v9 = vld [vmem:[%s2663_s3 + $0x38] sm:$0xff]  }
   0x4   :  { %1973 = vmatpush3.bf16.msra.mxu1 %v2187_v3  ;;  %v2193_v10 = vld [vmem:[%s2664_s4] sm:$0xff]   ;;  %v2196_v11 = vld [vmem:[%s2664_s4 + $0x10] sm:$0xff]   ;;  %v2195_v12 = vld [vmem:[%s2664_s4 + $0x8] sm:$0xff]  }
   0x5   :  { %1974 = vmatprep.subr.bf16.mxu1 %v2268_v1  ;;  %v2198_v13 = vld [vmem:[%s2664_s4 + $0x18] sm:$0xff]   ;;  %v2197_v14 = vld [vmem:[%s2661_s1] sm:$0xff]   ;;  %v2201_v16 = vld [vmem:[%s2664_s4 + $0x30] sm:$0xff]  }
   0x6   :  { %1967 = vmatpush3.bf16.msra.mxu0 %v2186_v2  ;;  %v2199_v15 = vld [vmem:[%s2664_s4 + $0x20] sm:$0xff]  }
   0x7   :  { %1980 = vmatprep.subr.bf16.mxu0 %v2268_v1 }
   0x8   :  { %1975 = vmatpush3.bf16.msra.mxu1 %v2190_v5 }
   0x9   :  { %1969 = vmatmul.mubr.msk.bf16.vlgmr.msra.gmra.mrb[0].mxu0 %vm67_vm1, %v2188_v4  ;;  %1988 = vmatprep.subr.bf16.mxu1 %v2268_v1 }
   0xa   :  { %1981 = vmatpush3.bf16.msra.mxu0 %v2189_v6  ;;  %1984 = vmatprep.mubr.msk.bf16.mxu0 %vm2269_vm0, %v2268_v1 }
   0xb   :  { %1982 = vmatprep.subr.bf16.mxu0 %v2268_v1  ;;  %1977 = vmatmul.mubr.msk.bf16.vlgmr.msra.gmra.mrb[0].mxu1 %vm67_vm1, %v2188_v4 }
   0xc   :  { %1989 = vmatpush3.bf16.msra.mxu1 %v2192_v7  ;;  %1992 = vmatprep.mubr.msk.bf16.mxu1 %vm2269_vm0, %v2268_v1 }
   0xd   :  { %1990 = vmatprep.subr.bf16.mxu1 %v2268_v1 }
   0xe   :  { %1983 = vmatpush3.bf16.msra.mxu0 %v2191_v8 }
   0xf   :  { %1996 = vmatprep.subr.bf16.mxu0 %v2268_v1 }
  0x10   :  { %1991 = vmatpush3.bf16.msra.mxu1 %v2194_v9 }
  0x11   :  { %1985 = vmatmul.mubr.msk.bf16.vlgmr.msra.gmra.mrb[4].mxu0 %vm67_vm1, %v2188_v4  ;;  %2004 = vmatprep.subr.bf16.mxu1 %v2268_v1 }
  0x12   :  { %1997 = vmatpush3.bf16.msra.mxu0 %v2193_v10  ;;  %2000 = vmatprep.mubr.msk.bf16.mxu0 %vm2269_vm0, %v2268_v1 }
  0x13   :  { %1998 = vmatprep.subr.bf16.mxu0 %v2268_v1  ;;  %1993 = vmatmul.mubr.msk.bf16.vlgmr.msra.gmra.mrb[4].mxu1 %vm67_vm1, %v2188_v4 }
  0x14   :  { %2005 = vmatpush3.bf16.msra.mxu1 %v2196_v11  ;;  %2008 = vmatprep.mubr.msk.bf16.mxu1 %vm2269_vm0, %v2268_v1 }
  0x15   :  { %2006 = vmatprep.subr.bf16.mxu1 %v2268_v1 }
  0x16   :  { %1999 = vmatpush3.bf16.msra.mxu0 %v2195_v12 }
  0x17   :  { %2012 = vmatprep.subr.bf16.mxu0 %v2268_v1 }
  0x18   :  { %2007 = vmatpush3.bf16.msra.mxu1 %v2198_v13 }
  0x19   :  { %12 = vsyncpa [#allocation3], 0  ;;  %2001 = vmatmul.mubr.msk.bf16.vlgmr.msra.gmra.mrb[8].mxu0 %vm67_vm1, %v2197_v14  ;;  %2020 = vmatprep.subr.bf16.mxu1 %v2268_v1  ;;  %v2200_v17 = vld [vmem:[%s2664_s4 + $0x28] sm:$0xff]   ;;  %v2202_v18 = vld [vmem:[%s2664_s4 + $0x38] sm:$0xff]   ;;  %vm767_vm2 = vcmask 64512   ;;  %vm1235_vm3 = vcmask 1043456  }
  0x1a   :  { %2013 = vmatpush3.bf16.msra.mxu0 %v2199_v15  ;;  %2016 = vmatprep.mubr.msk.bf16.mxu0 %vm2269_vm0, %v2268_v1  ;;  %v2203_v19 = vld [vmem:[%s2665_s5] sm:$0xff]   ;;  %v2204_v20 = vld [vmem:[%s2665_s5 + $0x8] sm:$0xff]   ;;  %v2205_v21 = vld [vmem:[%s2665_s5 + $0x10] sm:$0xff]  }
  0x1b   :  { %2009 = vmatmul.mubr.msk.bf16.vlgmr.msra.gmra.mrb[8].mxu1 %vm67_vm1, %v2197_v14  ;;  %2014 = vmatprep.subr.bf16.mxu0 %v2268_v1  ;;  %v2206_v22 = vld [vmem:[%s2662_s2] sm:$0xff]   ;;  %v2207_v23 = vld [vmem:[%s2665_s5 + $0x18] sm:$0xff]   ;;  %v2209_v25 = vld [vmem:[%s2665_s5 + $0x30] sm:$0xff]  }
  0x1c   :  { %2021 = vmatpush3.bf16.msra.mxu1 %v2201_v16  ;;  %2024 = vmatprep.mubr.msk.bf16.mxu1 %vm2269_vm0, %v2268_v1  ;;  %v2208_v24 = vld [vmem:[%s2665_s5 + $0x20] sm:$0xff]   ;;  %v2210_v26 = vld [vmem:[%s2665_s5 + $0x28] sm:$0xff]   ;;  %v2211_v27 = vld [vmem:[%s2665_s5 + $0x38] sm:$0xff]  }
  0x1d   :  { %2022 = vmatprep.subr.bf16.mxu1 %v2268_v1 }
  0x1e   :  { %2015 = vmatpush3.bf16.msra.mxu0 %v2200_v17 }
  0x1f   :  { %2028 = vmatprep.subr.bf16.mxu0 %v2268_v1 }
  0x20   :  { %2023 = vmatpush3.bf16.msra.mxu1 %v2202_v18 }
  0x21   :  { %2017 = vmatmul.mubr.msk.bf16.vlgmr.msra.gmra.mrb[12].mxu0 %vm67_vm1, %v2197_v14  ;;  %2036 = vmatprep.subr.bf16.mxu1 %v2268_v1 }
  0x22   :  { %2029 = vmatpush3.bf16.msra.mxu0 %v2203_v19  ;;  %2032 = vmatprep.mubr.msk.bf16.mxu0 %vm2269_vm0, %v2268_v1 }
  0x23   :  { %2025 = vmatmul.mubr.msk.bf16.vlgmr.msra.gmra.mrb[12].mxu1 %vm67_vm1, %v2197_v14  ;;  %2030 = vmatprep.subr.bf16.mxu0 %v2268_v1 }
  0x24   :  { %2040 = vmatprep.mubr.msk.bf16.mxu1 %vm2269_vm0, %v2268_v1  ;;  %2037 = vmatpush3.bf16.msra.mxu1 %v2205_v21 }
  0x25   :  { %2038 = vmatprep.subr.bf16.mxu1 %v2268_v1 }
  0x26   :  { %2031 = vmatpush3.bf16.msra.mxu0 %v2204_v20 }
  0x27   :  { %2044 = vmatprep.subr.bf16.mxu0 %v2268_v1 }
  0x28   :  { %2039 = vmatpush3.bf16.msra.mxu1 %v2207_v23 }
  0x29   :  { %2033 = vmatmul.mubr.msk.bf16.vlgmr.msra.gmra.mrb[16].mxu0 %vm67_vm1, %v2206_v22  ;;  %2052 = vmatprep.subr.bf16.mxu1 %v2268_v1 }
  0x2a   :  { %2048 = vmatprep.mubr.msk.bf16.mxu0 %vm2269_vm0, %v2268_v1  ;;  %2045 = vmatpush3.bf16.msra.mxu0 %v2208_v24 }
  0x2b   :  { %2041 = vmatmul.mubr.msk.bf16.vlgmr.msra.gmra.mrb[16].mxu1 %vm67_vm1, %v2206_v22  ;;  %2046 = vmatprep.subr.bf16.mxu0 %v2268_v1 }
  0x2c   :  { %2053 = vmatpush3.bf16.msra.mxu1 %v2209_v25  ;;  %2056 = vmatprep.mubr.msk.bf16.mxu1 %vm2269_vm0, %v2268_v1 }
  0x2d   :  { %2054 = vmatprep.subr.bf16.mxu1 %v2268_v1 }
  0x2e   :  { %2047 = vmatpush3.bf16.msra.mxu0 %v2210_v26 }
  0x2f   :  { %2060 = vmatprep.subr.bf16.mxu0 %v2268_v1 }
  0x30   :  { %2055 = vmatpush3.bf16.msra.mxu1 %v2211_v27 }
  0x31   :  { %2049 = vmatmul.mubr.msk.bf16.vlgmr.msra.gmra.mrb[20].mxu0 %vm67_vm1, %v2206_v22  ;;  %2066 = vmatprep.subr.bf16.mxu1 %v2268_v1 }
  0x32   :  { %2062 = vmatprep.mubr.msk.bf16.mxu0 %vm2269_vm0, %v2268_v1 }
  0x33   :  { %2057 = vmatmul.mubr.msk.bf16.vlgmr.msra.gmra.mrb[20].mxu1 %vm67_vm1, %v2206_v22 }
  0x34   :  { %2068 = vmatprep.mubr.msk.bf16.mxu1 %vm2269_vm0, %v2268_v1 }
  0xdc   :  { %v105_v28 = vpop.f32.mrb[0].mxu0 }
  0xdd   :  { %v1970_v29 = vpop.f32.mrb[1].mxu0  ;;  %v743_v58 = vpack.c.bf16 %v105_v28, %v105_v28 }
  0xde   :  { %v108_v30 = vpop.f32.mrb[2].mxu0  ;;  %v158_v31 = vpop.f32.mrb[0].mxu1 }
  0xdf   :  { %v1971_v32 = vpop.f32.mrb[3].mxu0  ;;  %v1978_v33 = vpop.f32.mrb[1].mxu1  ;;  %v744_v0 = vpack.c.bf16 %v108_v30, %v108_v30  ;;  %v745_v9 = vpack.c.bf16 %v158_v31, %v158_v31 }
  0xe0   :  { %v161_v34 = vpop.f32.mrb[2].mxu1 }
  0xe1   :  { %v1979_v35 = vpop.f32.mrb[3].mxu1  ;;  %v746_v11 = vpack.c.bf16 %v161_v34, %v161_v34 }
  0xe4   :  { %v2460_v36 = vpop.f32.mrb[4].mxu0 }
  0xe5   :  { %v1986_v37 = vpop.f32.mrb[5].mxu0  ;;  %v747_v15 = vpack.c.bf16 %v2460_v36, %v2460_v36 }
  0xe6   :  { %v2462_v38 = vpop.f32.mrb[6].mxu0  ;;  %v2464_v39 = vpop.f32.mrb[4].mxu1 }
  0xe7   :  { %v1987_v40 = vpop.f32.mrb[7].mxu0  ;;  %v1994_v41 = vpop.f32.mrb[5].mxu1  ;;  %v748_v17 = vpack.c.bf16 %v2462_v38, %v2462_v38  ;;  %v749_v19 = vpack.c.bf16 %v2464_v39, %v2464_v39 }
  0xe8   :  { %v2466_v42 = vpop.f32.mrb[6].mxu1 }
  0xe9   :  { %v1995_v43 = vpop.f32.mrb[7].mxu1  ;;  %v750_v20 = vpack.c.bf16 %v2466_v42, %v2466_v42 }
  0xec   :  { %v341_v44 = vpop.f32.mrb[8].mxu0 }
  0xed   :  { %v751_v45 = vpack.c.bf16 %v341_v44, %v341_v44  ;;  %v2002_v46 = vpop.f32.mrb[9].mxu0 }
  0xee   :  { %v344_v47 = vpop.f32.mrb[10].mxu0  ;;  %v394_v48 = vpop.f32.mrb[8].mxu1 }
  0xef   :  { %v772_v49 = vsel %vm767_vm2, %v751_v45, 0  ;;  %v752_v50 = vpack.c.bf16 %v344_v47, %v344_v47  ;;  %v2003_v51 = vpop.f32.mrb[11].mxu0  ;;  %v2010_v52 = vpop.f32.mrb[9].mxu1  ;;  %v753_v55 = vpack.c.bf16 %v394_v48, %v394_v48 }
  0xf0   :  { %2061 = vmatpush3.bf16.xpose.msra.mxu0 %v772_v49  ;;  %v397_v53 = vpop.f32.mrb[10].mxu1 }
  0xf1   :  { %v818_v54 = vsel %vm767_vm2, %v752_v50, 0  ;;  %v2011_v56 = vpop.f32.mrb[11].mxu1  ;;  %2072 = vmatprep.subr.bf16.mxu0 %v2268_v1  ;;  %v864_v59 = vsel %vm767_vm2, %v753_v55, 0  ;;  %v754_v60 = vpack.c.bf16 %v397_v53, %v397_v53 }
  0xf2   :  { %2067 = vmatpush3.bf16.xpose.msra.mxu1 %v818_v54 }
  0xf3   :  { %2078 = vmatprep.subr.bf16.mxu1 %v2268_v1  ;;  %v910_v5 = vsel %vm767_vm2, %v754_v60, 0 }
  0xf4   :  { %v447_v57 = vpop.f32.mrb[12].mxu0 }
  0xf5   :  { %v2018_v61 = vpop.f32.mrb[13].mxu0  ;;  %v755_v6 = vpack.c.bf16 %v447_v57, %v447_v57 }
  0xf6   :  { %v450_v62 = vpop.f32.mrb[14].mxu0  ;;  %v500_v63 = vpop.f32.mrb[12].mxu1 }
  0xf7   :  { %2063 = vmatmul.mubr.msk.bf16.vlgmr.msra.gmra.mrb[24].mxu0 %vm767_vm2, %v743_v58  ;;  %v2019_v2 = vpop.f32.mrb[15].mxu0  ;;  %v2026_v3 = vpop.f32.mrb[13].mxu1  ;;  %v756_v8 = vpack.c.bf16 %v450_v62, %v450_v62  ;;  %v956_v10 = vsel %vm767_vm2, %v755_v6, 0  ;;  %v757_v13 = vpack.c.bf16 %v500_v63, %v500_v63 }
  0xf8   :  { %2073 = vmatpush3.bf16.xpose.msra.mxu0 %v864_v59  ;;  %2074 = vmatprep.mubr.msk.bf16.mxu0 %vm2269_vm0, %v2268_v1  ;;  %v503_v4 = vpop.f32.mrb[14].mxu1 }
  0xf9   :  { %2069 = vmatmul.mubr.msk.bf16.vlgmr.msra.gmra.mrb[24].mxu1 %vm767_vm2, %v744_v0  ;;  %2084 = vmatprep.subr.bf16.mxu0 %v2268_v1  ;;  %v2027_v7 = vpop.f32.mrb[15].mxu1  ;;  %v1002_v12 = vsel %vm767_vm2, %v756_v8, 0  ;;  %v758_v14 = vpack.c.bf16 %v503_v4, %v503_v4  ;;  %v1048_v16 = vsel %vm767_vm2, %v757_v13, 0 }
  0xfa   :  { %2079 = vmatpush3.bf16.xpose.msra.mxu1 %v910_v5  ;;  %2080 = vmatprep.mubr.msk.bf16.mxu1 %vm2269_vm0, %v2268_v1 }
  0xfb   :  { %2090 = vmatprep.subr.bf16.mxu1 %v2268_v1  ;;  %v1094_v18 = vsel %vm767_vm2, %v758_v14, 0 }
  0xfc   :  { %v577_v21 = vpop.f32.mrb[16].mxu0 }
  0xfd   :  { %v759_v22 = vpack.c.bf16 %v577_v21, %v577_v21  ;;  %v2034_v23 = vpop.f32.mrb[17].mxu0 }
  0xfe   :  { %v580_v24 = vpop.f32.mrb[18].mxu0  ;;  %v2517_v28 = vpop.f32.mrb[16].mxu1 }
  0xff   :  { %2075 = vmatmul.mubr.msk.bf16.vlgmr.msra.gmra.mrb[28].mxu0 %vm767_vm2, %v745_v9  ;;  %v1237_v25 = vsel %vm1235_vm3, %v759_v22, 0  ;;  %v760_v26 = vpack.c.bf16 %v580_v24, %v580_v24  ;;  %v2035_v27 = vpop.f32.mrb[19].mxu0  ;;  %v2042_v30 = vpop.f32.mrb[17].mxu1 }
 0x100   :  { %2085 = vmatpush3.bf16.xpose.msra.mxu0 %v956_v10  ;;  %2086 = vmatprep.mubr.msk.bf16.mxu0 %vm2269_vm0, %v2268_v1  ;;  %v2521_v31 = vpop.f32.mrb[18].mxu1 }
 0x101   :  { %2081 = vmatmul.mubr.msk.bf16.vlgmr.msra.gmra.mrb[28].mxu1 %vm767_vm2, %v746_v11  ;;  %2096 = vmatprep.subr.bf16.mxu0 %v2268_v1  ;;  %v1283_v29 = vsel %vm1235_vm3, %v760_v26, 0  ;;  %v2043_v32 = vpop.f32.mrb[19].mxu1 }
 0x102   :  { %2091 = vmatpush3.bf16.xpose.msra.mxu1 %v1002_v12  ;;  %2092 = vmatprep.mubr.msk.bf16.mxu1 %vm2269_vm0, %v2268_v1 }
 0x103   :  { %2102 = vmatprep.subr.bf16.mxu1 %v2268_v1 }
 0x104   :  { %v2524_v33 = vpop.f32.mrb[20].mxu0 }
 0x105   :  { %v2050_v34 = vpop.f32.mrb[21].mxu0 }
 0x106   :  { %v2526_v35 = vpop.f32.mrb[22].mxu0  ;;  %v2528_v36 = vpop.f32.mrb[20].mxu1 }
 0x107   :  { %2087 = vmatmul.mubr.msk.bf16.vlgmr.msra.gmra.mrb[32].mxu0 %vm767_vm2, %v747_v15  ;;  %v2051_v37 = vpop.f32.mrb[23].mxu0  ;;  %v2058_v38 = vpop.f32.mrb[21].mxu1 }
 0x108   :  { %2097 = vmatpush3.bf16.xpose.msra.mxu0 %v1048_v16  ;;  %2098 = vmatprep.mubr.msk.bf16.mxu0 %vm2269_vm0, %v2268_v1  ;;  %v2530_v39 = vpop.f32.mrb[22].mxu1 }
 0x109   :  { %2093 = vmatmul.mubr.msk.bf16.vlgmr.msra.gmra.mrb[32].mxu1 %vm767_vm2, %v748_v17  ;;  %2108 = vmatprep.subr.bf16.mxu0 %v2268_v1  ;;  %v2059_v40 = vpop.f32.mrb[23].mxu1 }
 0x10a   :  { %2103 = vmatpush3.bf16.xpose.msra.mxu1 %v1094_v18  ;;  %2104 = vmatprep.mubr.msk.bf16.mxu1 %vm2269_vm0, %v2268_v1 }
 0x10b   :  { %2114 = vmatprep.subr.bf16.mxu1 %v2268_v1 }
 0x10f   :  { %2099 = vmatmul.mubr.msk.bf16.vlgmr.msra.gmra.mrb[36].mxu0 %vm767_vm2, %v749_v19 }
 0x110   :  { %2110 = vmatprep.mubr.msk.bf16.mxu0 %vm2269_vm0, %v2268_v1  ;;  %2109 = vmatpush3.bf16.msra.mxu0 %v1237_v25 }
 0x111   :  { %2105 = vmatmul.mubr.msk.bf16.vlgmr.msra.gmra.mrb[36].mxu1 %vm767_vm2, %v750_v20  ;;  %2120 = vmatprep.subr.bf16.mxu0 %v2268_v1 }
 0x112   :  { %2116 = vmatprep.mubr.msk.bf16.mxu1 %vm2269_vm0, %v2268_v1  ;;  %2115 = vmatpush3.bf16.msra.mxu1 %v1283_v29 }
 0x113   :  { %2126 = vmatprep.subr.bf16.mxu1 %v2268_v1 }
 0x1ca   :  { %v808_v41 = vpop.f32.mrb[24].mxu0 }
 0x1cb   :  { %v2064_v42 = vpop.f32.mrb[25].mxu0  ;;  %v1136_v43 = vsel %vm767_vm2, %v808_v41, -inf }
 0x1cc   :  { %v854_v44 = vpop.f32.mrb[24].mxu1  ;;  %1137 = vmax.xlane.f32.xlu0 %v1136_v43  ;;  %v811_v45 = vpop.f32.mrb[26].mxu0 }
 0x1cd   :  { %v2065_v46 = vpop.f32.mrb[27].mxu0  ;;  %v2070_v47 = vpop.f32.mrb[25].mxu1  ;;  %v1139_v50 = vsel %vm767_vm2, %v854_v44, -inf }
 0x1ce   :  { %v857_v48 = vpop.f32.mrb[26].mxu1 }
 0x1cf   :  { %v2071_v49 = vpop.f32.mrb[27].mxu1 }
 0x1d0   :  { %1140 = vmax.xlane.f32.xlu0 %v1139_v50 }
 0x1d2   :  { %v900_v51 = vpop.f32.mrb[28].mxu0 }
 0x1d3   :  { %v2076_v52 = vpop.f32.mrb[29].mxu0  ;;  %v1142_v53 = vsel %vm767_vm2, %v900_v51, -inf }
 0x1d4   :  { %v946_v54 = vpop.f32.mrb[28].mxu1  ;;  %1143 = vmax.xlane.f32.xlu1 %v1142_v53  ;;  %v903_v55 = vpop.f32.mrb[30].mxu0 }
 0x1d5   :  { %v2077_v56 = vpop.f32.mrb[31].mxu0  ;;  %v2082_v57 = vpop.f32.mrb[29].mxu1  ;;  %v1145_v60 = vsel %vm767_vm2, %v946_v54, -inf }
 0x1d6   :  { %v949_v58 = vpop.f32.mrb[30].mxu1 }
 0x1d7   :  { %v2083_v59 = vpop.f32.mrb[31].mxu1 }
 0x1d8   :  { %1146 = vmax.xlane.f32.xlu1 %v1145_v60 }
 0x1da   :  { %v992_v61 = vpop.f32.mrb[32].mxu0 }
 0x1db   :  { %v2088_v62 = vpop.f32.mrb[33].mxu0  ;;  %v1148_v63 = vsel %vm767_vm2, %v992_v61, -inf }
 0x1dc   :  { %v1038_v0 = vpop.f32.mrb[32].mxu1  ;;  %1149 = vmax.xlane.f32.xlu0 %v1148_v63  ;;  %v995_v2 = vpop.f32.mrb[34].mxu0 }
 0x1dd   :  { %v2089_v3 = vpop.f32.mrb[35].mxu0  ;;  %v2094_v4 = vpop.f32.mrb[33].mxu1  ;;  %v1151_v5 = vsel %vm767_vm2, %v1038_v0, -inf }
 0x1de   :  { %v1041_v6 = vpop.f32.mrb[34].mxu1  ;;  %1152 = vmax.xlane.f32.xlu1 %v1151_v5  ;;  %v761_v5 = vpack.c.bf16 %v2517_v28, %v2517_v28 }
 0x1df   :  { %v2095_v7 = vpop.f32.mrb[35].mxu1 }
 0x1e2   :  { %v1084_v8 = vpop.f32.mrb[36].mxu0 }
 0x1e3   :  { %v2100_v9 = vpop.f32.mrb[37].mxu0  ;;  %v1154_v10 = vsel %vm767_vm2, %v1084_v8, -inf }
 0x1e4   :  { %v1130_v11 = vpop.f32.mrb[36].mxu1  ;;  %1155 = vmax.xlane.f32.xlu0 %v1154_v10  ;;  %v1087_v12 = vpop.f32.mrb[38].mxu0  ;;  %v1329_v10 = vsel %vm1235_vm3, %v761_v5, 0 }
 0x1e5   :  { %v2101_v13 = vpop.f32.mrb[39].mxu0  ;;  %v2106_v14 = vpop.f32.mrb[37].mxu1  ;;  %v1157_v15 = vsel %vm767_vm2, %v1130_v11, -inf }
 0x1e6   :  { %v1133_v16 = vpop.f32.mrb[38].mxu1  ;;  %1158 = vmax.xlane.f32.xlu1 %v1157_v15 }
 0x1e7   :  { %v2107_v17 = vpop.f32.mrb[39].mxu1 }
 0x259   :  { %v1138_v18 = vpop.xlane.xlu0 %1137 }
 0x25a   :  { %v1160_v19 = vsub.f32 %v808_v41, %v1138_v18 }
 0x25c   :  { %v1168_v20 = vmul.f32 1.442695, %v1160_v19 }
 0x25d   :  { %v1141_v21 = vpop.xlane.xlu0 %1140 }
 0x25e   :  { %2212 = vpow2.f32 %v1168_v20  ;;  %v1161_v22 = vsub.f32 %v854_v44, %v1141_v21  ;;  %v764_v21 = vpack.c.bf16 %v2526_v35, %v2526_v35  ;;  %v765_v35 = vpack.c.bf16 %v2528_v36, %v2528_v36 }
 0x260   :  { %v1170_v23 = vmul.f32 1.442695, %v1161_v22 }
 0x261   :  { %v1144_v24 = vpop.xlane.xlu1 %1143 }
 0x262   :  { %2214 = vpow2.f32 %v1170_v23  ;;  %v1162_v25 = vsub.f32 %v900_v51, %v1144_v24 }
 0x264   :  { %v1172_v26 = vmul.f32 1.442695, %v1162_v25 }
 0x265   :  { %v1147_v27 = vpop.xlane.xlu1 %1146 }
 0x266   :  { %2216 = vpow2.f32 %v1172_v26  ;;  %v1163_v29 = vsub.f32 %v946_v54, %v1147_v27  ;;  %v1467_v26 = vsel %vm1235_vm3, %v764_v21, 0 }
 0x268   :  { %v2213_v30 = vpop.eup %2212  ;;  %v1174_v32 = vmul.f32 1.442695, %v1163_v29 }
 0x269   :  { %v1150_v34 = vpop.xlane.xlu0 %1149  ;;  %v1184_v37 = vsel %vm767_vm2, %v2213_v30, 0.0 }
 0x26a   :  { %2218 = vpow2.f32 %v1174_v32  ;;  %v1164_v38 = vsub.f32 %v992_v61, %v1150_v34  ;;  %1185 = vadd.xlane.f32.xlu0 %v1184_v37  ;;  %v1513_v34 = vsel %vm1235_vm3, %v765_v35, 0  ;;  %v766_v37 = vpack.c.bf16 %v2530_v39, %v2530_v39 }
 0x26b   :  { %v1153_v40 = vpop.xlane.xlu1 %1152 }
 0x26c   :  { %v2215_v41 = vpop.eup %2214  ;;  %v1176_v42 = vmul.f32 1.442695, %v1164_v38  ;;  %v1165_v43 = vsub.f32 %v1038_v0, %v1153_v40  ;;  %v1559_v40 = vsel %vm1235_vm3, %v766_v37, 0 }
 0x26d   :  { %v1187_v44 = vsel %vm767_vm2, %v2215_v41, 0.0 }
 0x26e   :  { %2220 = vpow2.f32 %v1176_v42  ;;  %v1178_v45 = vmul.f32 1.442695, %v1165_v43  ;;  %1188 = vadd.xlane.f32.xlu1 %v1187_v44 }
 0x270   :  { %v2217_v46 = vpop.eup %2216  ;;  %2222 = vpow2.f32 %v1178_v45  ;;  %v1605_v45 = vld [vmem:[%s2666_s6] sm:$0xf] }
 0x271   :  { %v1156_v47 = vpop.xlane.xlu0 %1155  ;;  %v1190_v48 = vsel %vm767_vm2, %v2217_v46, 0.0 }
 0x272   :  { %v1166_v49 = vsub.f32 %v1084_v8, %v1156_v47  ;;  %1191 = vadd.xlane.f32.xlu0 %v1190_v48  ;;  %v1606_v47 = vld [vmem:[%s2666_s6 + $0x4] sm:$0xf] }
 0x273   :  { %v1159_v50 = vpop.xlane.xlu1 %1158  ;;  %v1660_v48 = vsel %vm1235_vm3, %v1606_v47, 0 }
 0x274   :  { %v2219_v51 = vpop.eup %2218  ;;  %v1180_v52 = vmul.f32 1.442695, %v1166_v49  ;;  %v1167_v53 = vsub.f32 %v1130_v11, %v1159_v50  ;;  %v762_v11 = vpack.c.bf16 %v2521_v31, %v2521_v31  ;;  %v763_v31 = vpack.c.bf16 %v2524_v33, %v2524_v33 }
 0x275   :  { %v1193_v54 = vsel %vm767_vm2, %v2219_v51, 0.0 }
 0x276   :  { %2224 = vpow2.f32 %v1180_v52  ;;  %v1182_v55 = vmul.f32 1.442695, %v1167_v53  ;;  %1194 = vadd.xlane.f32.xlu1 %v1193_v54  ;;  %v1375_v16 = vsel %vm1235_vm3, %v762_v11, 0  ;;  %v1421_v20 = vsel %vm1235_vm3, %v763_v31, 0  ;;  %v1607_v52 = vld [vmem:[%s2666_s6 + $0x8] sm:$0xf] }
 0x278   :  { %v2544_v56 = vpop.eup %2220  ;;  %2226 = vpow2.f32 %v1182_v55 }
 0x279   :  { %v1196_v57 = vsel %vm767_vm2, %v2544_v56, 0.0 }
 0x27a   :  { %v2548_v58 = vpop.eup %2222  ;;  %1197 = vadd.xlane.f32.xlu0 %v1196_v57  ;;  %v1707_v57 = vsel %vm1235_vm3, %v1607_v52, 0 }
 0x27b   :  { %v1199_v59 = vsel %vm767_vm2, %v2548_v58, 0.0 }
 0x27c   :  { %1200 = vadd.xlane.f32.xlu1 %v1199_v59 }
 0x280   :  { %v2552_v60 = vpop.eup %2224 }
 0x281   :  { %v1202_v61 = vsel %vm767_vm2, %v2552_v60, 0.0 }
 0x282   :  { %v2556_v62 = vpop.eup %2226  ;;  %1203 = vadd.xlane.f32.xlu0 %v1202_v61 }
 0x283   :  { %v1205_v63 = vsel %vm767_vm2, %v2556_v62, 0.0 }
 0x284   :  { %1206 = vadd.xlane.f32.xlu1 %v1205_v63  ;;  %v1608_v63 = vld [vmem:[%s2666_s6 + $0xc] sm:$0xf]  ;;  %s2270_s6 = smov [#allocation2]  }
 0x285   :  { %v1754_v5 = vsel %vm1235_vm3, %v1608_v63, 0  ;;  %s1818_s8 = sshll.u32 %s2270_s6, 4  ;;  %s1819_s8 = int_to_ptr.vmem [resolvable:$true] %s1818_s8 }
 0x286   :  { %s2244_s9 = scalar_lea.vmem %s1819_s8, 256  ;;  %p2249_p1 = scmp.lt.s32.totalorder %s1819_s8, %s1819_s8 }
 0x287   :  { %p2245_p0 = scmp.ne.s32.totalorder %s1819_s8, %s2244_s9  ;;  %p2250_p2 = scmp.lt.s32.totalorder %s2244_s9, %s2244_s9 }
 0x289   :  { %p2251_p3 = por %p2250_p2, %p2249_p1 }
 0x28b   :  { %p2252_p4 = pnand %p2251_p3, %p2245_p0 }
 0x2f7   :  { %v1186_v0 = vpop.xlane.xlu0 %1185 }
 0x2f8   :  { %2228 = vrcp.f32 %v1186_v0 }
 0x2fb   :  { %v1189_v2 = vpop.xlane.xlu1 %1188 }
 0x2fc   :  { %2230 = vrcp.f32 %v1189_v2 }
 0x2ff   :  { %v1192_v3 = vpop.xlane.xlu0 %1191 }
 0x300   :  { %2232 = vrcp.f32 %v1192_v3 }
 0x302   :  { %v2229_v4 = vpop.eup %2228 }
 0x303   :  { %v1216_v6 = vmul.f32 %v2229_v4, %v2213_v30  ;;  %v1195_v7 = vpop.xlane.xlu1 %1194 }
 0x304   :  { %2234 = vrcp.f32 %v1195_v7 }
 0x305   :  { %v1224_v8 = vpack.c.bf16 %v1216_v6, %v1216_v6 }
 0x306   :  { %v2231_v9 = vpop.eup %2230 }
 0x307   :  { %v1217_v12 = vmul.f32 %v2231_v9, %v2215_v41  ;;  %2111 = vmatmul.mubr.msk.bf16.vlgmr.msra.gmra.mrb[40].mxu0 %vm767_vm2, %v1224_v8  ;;  %v1198_v13 = vpop.xlane.xlu0 %1197 }
 0x308   :  { %2121 = vmatpush3.bf16.msra.mxu0 %v1329_v10  ;;  %2236 = vrcp.f32 %v1198_v13  ;;  %2122 = vmatprep.mubr.msk.bf16.mxu0 %vm2269_vm0, %v2268_v1 }
 0x309   :  { %v1201_v28 = vpop.xlane.xlu1 %1200  ;;  %v1225_v14 = vpack.c.bf16 %v1217_v12, %v1217_v12  ;;  %2132 = vmatprep.subr.bf16.mxu0 %v2268_v1 }
 0x30a   :  { %v2233_v15 = vpop.eup %2232  ;;  %2238 = vrcp.f32 %v1201_v28 }
 0x30b   :  { %v1218_v17 = vmul.f32 %v2233_v15, %v2217_v46  ;;  %2117 = vmatmul.mubr.msk.bf16.vlgmr.msra.gmra.mrb[40].mxu1 %vm767_vm2, %v1225_v14  ;;  %v1613_v46 = vsel %vm1235_vm3, %v1605_v45, 0 }
 0x30c   :  { %2127 = vmatpush3.bf16.msra.mxu1 %v1375_v16  ;;  %2128 = vmatprep.mubr.msk.bf16.mxu1 %vm2269_vm0, %v2268_v1 }
 0x30d   :  { %v1226_v18 = vpack.c.bf16 %v1218_v17, %v1218_v17  ;;  %2138 = vmatprep.subr.bf16.mxu1 %v2268_v1 }
 0x30e   :  { %v2235_v19 = vpop.eup %2234 }
 0x30f   :  { %v1219_v22 = vmul.f32 %v2235_v19, %v2219_v51  ;;  %2123 = vmatmul.mubr.msk.bf16.vlgmr.msra.gmra.mrb[44].mxu0 %vm767_vm2, %v1226_v18  ;;  %v1204_v33 = vpop.xlane.xlu0 %1203 }
 0x310   :  { %2133 = vmatpush3.bf16.msra.mxu0 %v1421_v20  ;;  %2240 = vrcp.f32 %v1204_v33  ;;  %2134 = vmatprep.mubr.msk.bf16.mxu0 %vm2269_vm0, %v2268_v1 }
 0x311   :  { %v1207_v23 = vpop.xlane.xlu1 %1206  ;;  %v1227_v24 = vpack.c.bf16 %v1219_v22, %v1219_v22  ;;  %2144 = vmatprep.subr.bf16.mxu0 %v2268_v1 }
 0x312   :  { %v2237_v25 = vpop.eup %2236  ;;  %2242 = vrcp.f32 %v1207_v23 }
 0x313   :  { %v1220_v27 = vmul.f32 %v2237_v25, %v2544_v56  ;;  %2129 = vmatmul.mubr.msk.bf16.vlgmr.msra.gmra.mrb[44].mxu1 %vm767_vm2, %v1227_v24 }
 0x314   :  { %v2239_v29 = vpop.eup %2238  ;;  %2139 = vmatpush3.bf16.msra.mxu1 %v1467_v26  ;;  %2140 = vmatprep.mubr.msk.bf16.mxu1 %vm2269_vm0, %v2268_v1 }
 0x315   :  { %v1221_v30 = vmul.f32 %v2239_v29, %v2548_v58  ;;  %v1228_v32 = vpack.c.bf16 %v1220_v27, %v1220_v27  ;;  %2150 = vmatprep.subr.bf16.mxu1 %v2268_v1 }
 0x317   :  { %2135 = vmatmul.mubr.msk.bf16.vlgmr.msra.gmra.mrb[48].mxu0 %vm767_vm2, %v1228_v32  ;;  %v1229_v36 = vpack.c.bf16 %v1221_v30, %v1221_v30 }
 0x318   :  { %2145 = vmatpush3.bf16.msra.mxu0 %v1513_v34  ;;  %2146 = vmatprep.mubr.msk.bf16.mxu0 %vm2269_vm0, %v2268_v1 }
 0x319   :  { %2156 = vmatprep.subr.bf16.mxu0 %v2268_v1 }
 0x31a   :  { %v2241_v38 = vpop.eup %2240 }
 0x31b   :  { %v1222_v41 = vmul.f32 %v2241_v38, %v2552_v60  ;;  %2141 = vmatmul.mubr.msk.bf16.vlgmr.msra.gmra.mrb[48].mxu1 %vm767_vm2, %v1229_v36 }
 0x31c   :  { %v2243_v42 = vpop.eup %2242  ;;  %2151 = vmatpush3.bf16.msra.mxu1 %v1559_v40  ;;  %2152 = vmatprep.mubr.msk.bf16.mxu1 %vm2269_vm0, %v2268_v1 }
 0x31d   :  { %v1230_v39 = vpack.c.bf16 %v1222_v41, %v1222_v41  ;;  %v1223_v43 = vmul.f32 %v2243_v42, %v2556_v62  ;;  %2162 = vmatprep.subr.bf16.mxu1 %v2268_v1 }
 0x31f   :  { %2147 = vmatmul.mubr.msk.bf16.vlgmr.msra.gmra.mrb[52].mxu0 %vm767_vm2, %v1230_v39  ;;  %v1231_v44 = vpack.c.bf16 %v1223_v43, %v1223_v43 }
 0x320   :  { %2158 = vmatprep.mubr.msk.bf16.mxu0 %vm2269_vm0, %v2268_v1  ;;  %2157 = vmatpush3.bf16.msra.mxu0 %v1613_v46 }
 0x321   :  { %2168 = vmatprep.subr.bf16.mxu0 %v2268_v1 }
 0x323   :  { %2153 = vmatmul.mubr.msk.bf16.vlgmr.msra.gmra.mrb[52].mxu1 %vm767_vm2, %v1231_v44 }
 0x324   :  { %2164 = vmatprep.mubr.msk.bf16.mxu1 %vm2269_vm0, %v2268_v1  ;;  %2163 = vmatpush3.bf16.msra.mxu1 %v1660_v48 }
 0x325   :  { %2174 = vmatprep.subr.bf16.mxu1 %v2268_v1 }
 0x3da   :  { %v1273_v49 = vpop.f32.mrb[40].mxu0 }
 0x3db   :  { %v2112_v50 = vpop.f32.mrb[41].mxu0 }
 0x3dc   :  { %v1276_v51 = vpop.f32.mrb[42].mxu0 }
 0x3dd   :  { %v2113_v53 = vpop.f32.mrb[43].mxu0 }
 0x3de   :  { %v1319_v54 = vpop.f32.mrb[40].mxu1 }
 0x3df   :  { %v1601_v55 = vpack.c.bf16 %v1319_v54, %v1273_v49  ;;  %v2118_v56 = vpop.f32.mrb[41].mxu1 }
 0x3e0   :  { %v1322_v58 = vpop.f32.mrb[42].mxu1 }
 0x3e1   :  { %v2119_v59 = vpop.f32.mrb[43].mxu1  ;;  %2159 = vmatmul.mubr.msk.bf16.vlgmr.msra.gmra.mrb[56].mxu0 %vm767_vm2, %v1601_v55 }
 0x3e2   :  { %v1365_v60 = vpop.f32.mrb[44].mxu0  ;;  %2169 = vmatpush3.bf16.msra.mxu0 %v1707_v57  ;;  %2170 = vmatprep.mubr.msk.bf16.mxu0 %vm2269_vm0, %v2268_v1 }
 0x3e3   :  { %v2124_v61 = vpop.f32.mrb[45].mxu0 }
 0x3e4   :  { %v1368_v62 = vpop.f32.mrb[46].mxu0 }
 0x3e5   :  { %v2125_v0 = vpop.f32.mrb[47].mxu0 }
 0x3e6   :  { %v1411_v2 = vpop.f32.mrb[44].mxu1 }
 0x3e7   :  { %v1602_v3 = vpack.c.bf16 %v1411_v2, %v1365_v60  ;;  %v2130_v4 = vpop.f32.mrb[45].mxu1 }
 0x3e8   :  { %v1414_v6 = vpop.f32.mrb[46].mxu1 }
 0x3e9   :  { %v2131_v7 = vpop.f32.mrb[47].mxu1  ;;  %2165 = vmatmul.mubr.msk.bf16.vlgmr.msra.gmra.mrb[56].mxu1 %vm767_vm2, %v1602_v3 }
 0x3ea   :  { %v1457_v8 = vpop.f32.mrb[48].mxu0  ;;  %2175 = vmatpush3.bf16.msra.mxu1 %v1754_v5  ;;  %2176 = vmatprep.mubr.msk.bf16.mxu1 %vm2269_vm0, %v2268_v1 }
 0x3eb   :  { %v2136_v9 = vpop.f32.mrb[49].mxu0 }
 0x3ec   :  { %v1460_v10 = vpop.f32.mrb[50].mxu0 }
 0x3ed   :  { %v2137_v11 = vpop.f32.mrb[51].mxu0 }
 0x3ee   :  { %v1503_v12 = vpop.f32.mrb[48].mxu1 }
 0x3ef   :  { %v1603_v13 = vpack.c.bf16 %v1503_v12, %v1457_v8  ;;  %v2142_v28 = vpop.f32.mrb[49].mxu1 }
 0x3f0   :  { %v1506_v14 = vpop.f32.mrb[50].mxu1 }
 0x3f1   :  { %v2143_v15 = vpop.f32.mrb[51].mxu1  ;;  %2171 = vmatmul.mubr.msk.bf16.vlgmr.msra.gmra.mrb[60].mxu0 %vm767_vm2, %v1603_v13 }
 0x3f2   :  { %v1549_v16 = vpop.f32.mrb[52].mxu0 }
 0x3f3   :  { %v2148_v31 = vpop.f32.mrb[53].mxu0 }
 0x3f4   :  { %v1552_v17 = vpop.f32.mrb[54].mxu0 }
 0x3f5   :  { %v2149_v18 = vpop.f32.mrb[55].mxu0 }
 0x3f6   :  { %v1595_v19 = vpop.f32.mrb[52].mxu1 }
 0x3f7   :  { %v1604_v20 = vpack.c.bf16 %v1595_v19, %v1549_v16  ;;  %v2154_v21 = vpop.f32.mrb[53].mxu1 }
 0x3f8   :  { %v1598_v22 = vpop.f32.mrb[54].mxu1 }
 0x3f9   :  { %v2155_v33 = vpop.f32.mrb[55].mxu1  ;;  %2177 = vmatmul.mubr.msk.bf16.vlgmr.msra.gmra.mrb[60].mxu1 %vm767_vm2, %v1604_v20 }
 0x4b4   :  { %v1649_v1 = vpop.f32.mrb[56].mxu0 }
 0x4b5   :  { %v2160_v23 = vpop.f32.mrb[57].mxu0  ;;  %v1797_v35 = vsel %vm67_vm1, %v1649_v1, 0.0 }
 0x4b6   :  { %v1652_v24 = vpop.f32.mrb[58].mxu0 }
 0x4b7   :  { %v2161_v25 = vpop.f32.mrb[59].mxu0  ;;  %v1804_v34 = vsel %vm67_vm1, %v1652_v24, 0.0 }
 0x4bc   :  { %v1696_v26 = vpop.f32.mrb[56].mxu1 }
 0x4bd   :  { %v1798_v27 = vsel %vm67_vm1, %v1696_v26, 0.0  ;;  %v2166_v29 = vpop.f32.mrb[57].mxu1 }
 0x4be   :  { %v1799_v30 = vadd.f32 %v1798_v27, %v1797_v35  ;;  %v1699_v32 = vpop.f32.mrb[58].mxu1 }
 0x4bf   :  { %v1805_v37 = vsel %vm67_vm1, %v1699_v32, 0.0  ;;  %v2167_v36 = vpop.f32.mrb[59].mxu1 }
 0x4c0   :  { %v1806_v38 = vadd.f32 %v1805_v37, %v1804_v34 }
 0x4c4   :  { %v1743_v40 = vpop.f32.mrb[60].mxu0 }
 0x4c5   :  { %v1800_v41 = vsel %vm67_vm1, %v1743_v40, 0.0  ;;  %v2172_v42 = vpop.f32.mrb[61].mxu0 }
 0x4c6   :  { %v1801_v39 = vadd.f32 %v1800_v41, %v1799_v30  ;;  %v1746_v43 = vpop.f32.mrb[62].mxu0 }
 0x4c7   :  { %v1807_v44 = vsel %vm67_vm1, %v1746_v43, 0.0  ;;  %v2173_v45 = vpop.f32.mrb[63].mxu0 }
 0x4c8   :  { %v1808_v46 = vadd.f32 %v1807_v44, %v1806_v38 }
 0x4cc   :  { %v1790_v47 = vpop.f32.mrb[60].mxu1 }
 0x4cd   :  { %v1802_v48 = vsel %vm67_vm1, %v1790_v47, 0.0  ;;  %v2178_v49 = vpop.f32.mrb[61].mxu1 }
 0x4ce   :  { %v1803_v50 = vadd.f32 %v1802_v48, %v1801_v39  ;;  %v1793_v51 = vpop.f32.mrb[62].mxu1 }
 0x4cf   :  { %v1809_v52 = vsel %vm67_vm1, %v1793_v51, 0.0  ;;  %v2179_v53 = vpop.f32.mrb[63].mxu1 }
 0x4d0   :  { %1811 = vst.msk [vmem:[#allocation2] sm:$0xff] %vm67_vm1, %v1803_v50  ;;  %v1810_v54 = vadd.f32 %v1809_v52, %v1808_v46 }
 0x4d2   :  { %1812 = vst.msk [vmem:[#allocation2 + $0x8] sm:$0xff] %vm67_vm1, %v1810_v54 }
 0x4d3   :  { %2255 = shalt.err (!%p2252_p4)
}
 0x4d4   :  { %s2256_s12 = scalar_lea.hbm %s2667_s7, 256 }
 0x4d5   :  { %p2257_p5 = scmp.ne.s32.totalorder %s2667_s7, %s2256_s12  ;;  %p2260_p6 = scmp.lt.u32.totalorder %s2256_s12, %s2667_s7 }
 0x4d7   :  { %p2262_p7 = pnand %p2260_p6, %p2257_p5 }
 0x4d9   :  { %2265 = shalt.err (!%p2262_p7)
}
 0x4da   :  { %s2271_s15 = smov 128   ;;  %s2272_s16 = smov 8  }
 0x4db   :  { %1824 = dma.vmem_to_hbm [thread:$0]  %s1819_s8, 256, %s2667_s7, [#allocation3], %s2271_s15, %s2271_s15, %s2272_s16  }
 0x4dc   :  { %2266 = dma.done.wait [#allocation3], 256  }
 0x4dd   :  { %2267 = vsyncadd [#allocation3], 4294967040 }
 0x4de   :  { %1828 = vsyncpa [#allocation3], 1 }

</bundles_post_ra>
